<compile_context>
chip_gen: v6e
topology: v6e:2x2x1
jax: 0.10.0
libtpu: 0.0.40
codegen_flags: <defaults>
</compile_context>

<pallas_src>
import functools

import jax
import jax.numpy as jnp
from jax.experimental import pallas as pl
from jax.experimental.pallas import tpu as pltpu

HIDDEN = 120           # logical hidden width of the PyTorch module
LANE = 128             # padded hidden width (TPU lane count)
NEG_SLOPE = 0.01       # nn.LeakyReLU default negative_slope

# Per-row VMEM footprint used to cap the batch tile: double-buffered input
# and output tiles plus ~8 live activation temporaries, all lane-padded f32.
_PER_ROW_VMEM = (2 + 2 + 8) * LANE * 4


def _ceil_to(x, m):
    return (x + m - 1) // m * m


def _leaky_relu(x):
    return jnp.where(x > 0, x, NEG_SLOPE * x)


def _vmem_block_bytes(rows, cols, itemsize):
    """VMEM bytes of a (rows, cols) block after (8,128)-style layout tiling."""
    sub = 8 * (4 // itemsize)           # 8 sublanes for f32, 16 for bf16
    return _ceil_to(max(rows, 1), sub) * _ceil_to(max(cols, 1), LANE) * itemsize


def _chip_info():
    """Returns (tensorcores_per_chip, vmem_capacity_bytes, has_bf16_vpu)."""
    kind = ""
    try:
        dev = jax.devices()[0]
        if dev.platform == "tpu":
            kind = dev.device_kind.lower()
    except Exception:
        kind = ""
    is_v7 = "v7" in kind
    is_v5e = ("v5e" in kind) or ("v5 lite" in kind) or ("v5litepod" in kind)
    try:
        vmem_cap = int(pltpu.get_tpu_info().vmem_capacity_bytes)
    except Exception:
        vmem_cap = (64 << 20) if is_v7 else (128 << 20)
    if is_v7:
        vmem_cap = min(vmem_cap, 64 << 20)   # v7x: 64 MiB physical per TC
    n_tc = 2 if is_v7 else 1
    return n_tc, vmem_cap, (not is_v5e)      # v5e has no bf16 VPU


def _choose_tb(batch, n_tc, vmem_budget):
    rows = _ceil_to(max(batch, 1), 8)
    per_tc = -(-rows // max(n_tc, 1))
    tb = _ceil_to(per_tc, 8)
    max_tb = max(8, (vmem_budget // _PER_ROW_VMEM) // 8 * 8)
    return int(min(tb, max_tb, 8192))


def _mlp_kernel(x_ref,
                w1_ref, b1_ref,
                w2_ref, b2_ref,
                w3_ref, b3_ref,
                w4_ref, b4_ref,
                w5_ref, b5_ref,
                o_ref, *, act_dtype):
    # Layer 1: contracting dim is only ~8 (padded Cin) -> f32 MXU pass is
    # negligible; bias + activation in f32, then a single cast to act_dtype.
    h = jnp.dot(x_ref[...], w1_ref[...], preferred_element_type=jnp.float32)
    h = _leaky_relu(h + b1_ref[...]).astype(act_dtype)

    # Hidden layers: bf16 MXU inputs, f32 accumulation; cast the accumulator
    # once, then bias add + LeakyReLU in act_dtype (bf16 on v6e/v7x).
    def hidden(h, w_ref, b_ref):
        acc = jnp.dot(h.astype(jnp.bfloat16), w_ref[...],
                      preferred_element_type=jnp.float32)
        return _leaky_relu(acc.astype(act_dtype) + b_ref[...])

    h = hidden(h, w2_ref, b2_ref)
    h = hidden(h, w3_ref, b3_ref)
    h = hidden(h, w4_ref, b4_ref)

    # Layer 5: narrow (8-lane) output, f32 accumulate + f32 bias, f32 store.
    out = jnp.dot(h.astype(jnp.bfloat16), w5_ref[...],
                  preferred_element_type=jnp.float32) + b5_ref[...]
    o_ref[...] = out.astype(o_ref.dtype)


@functools.partial(jax.jit, static_argnames=("n_tc", "bf16_act", "vmem_cap"))
def _forward(x, params, *, n_tc, bf16_act, vmem_cap):
    B, Cin = x.shape
    Cout = params["W5"].shape[0]
    act_dtype = jnp.bfloat16 if bf16_act else jnp.float32
    act_size = 2 if bf16_act else 4

    cin_pad = _ceil_to(Cin, 8)          # one f32 sublane of input features
    out_pad = _ceil_to(Cout, 8)         # narrow, lane-masked output block

    # --- chip-aware tiling --------------------------------------------------
    vmem_cap_eff = int(max(min(vmem_cap - (8 << 20), 100 << 20), 16 << 20))
    tb = _choose_tb(B, n_tc, vmem_cap_eff - (2 << 20))
    B_pad = _ceil_to(B, tb)
    grid = (B_pad // tb,)

    # --- minimal host-side padding (single pad pass, skipped if no-op) -------
    if (B_pad, cin_pad) != (B, Cin):
        x_p = jnp.pad(x, ((0, B_pad - B), (0, cin_pad - Cin)))
    else:
        x_p = x

    def prep_w(name, in_pad, n_pad, dtype):
        W = params["W" + name]                       # [out, in] (PyTorch)
        Wp = jnp.pad(W.T, ((0, in_pad - W.shape[1]),
                           (0, n_pad - W.shape[0])))
        return Wp.astype(dtype)

    def prep_b(name, n_pad, dtype):
        b = params["b" + name]
        return jnp.pad(b, (0, n_pad - b.shape[0])).reshape(1, n_pad).astype(dtype)

    w1 = prep_w("1", cin_pad, LANE, jnp.float32)     # tiny K: keep f32
    b1 = prep_b("1", LANE, jnp.float32)
    w2 = prep_w("2", LANE, LANE, jnp.bfloat16)
    b2 = prep_b("2", LANE, act_dtype)
    w3 = prep_w("3", LANE, LANE, jnp.bfloat16)
    b3 = prep_b("3", LANE, act_dtype)
    w4 = prep_w("4", LANE, LANE, jnp.bfloat16)
    b4 = prep_b("4", LANE, act_dtype)
    w5 = prep_w("5", LANE, out_pad, jnp.bfloat16)    # narrow output lanes
    b5 = prep_b("5", out_pad, jnp.float32)

    # --- scheduling hints -----------------------------------------------------
    weight_hbm = (cin_pad * LANE * 4 + LANE * 4
                  + 3 * (LANE * LANE * 2 + LANE * act_size)
                  + LANE * out_pad * 2 + out_pad * 4)
    flops = 2 * B_pad * (cin_pad * LANE + 3 * LANE * LANE + LANE * out_pad)
    cost = pl.CostEstimate(
        flops=flops, transcendentals=0,
        bytes_accessed=B_pad * cin_pad * 4 + B_pad * out_pad * 4 + weight_hbm)

    weight_vmem = (_vmem_block_bytes(cin_pad, LANE, 4)
                   + _vmem_block_bytes(1, LANE, 4)
                   + 3 * (_vmem_block_bytes(LANE, LANE, 2)
                          + _vmem_block_bytes(1, LANE, act_size))
                   + _vmem_block_bytes(LANE, out_pad, 2)
                   + _vmem_block_bytes(1, out_pad, 4))
    vmem_est = (2 * _vmem_block_bytes(tb, cin_pad, 4)     # x tile (double-buffered)
                + 2 * _vmem_block_bytes(tb, out_pad, 4)   # out tile (double-buffered)
                + 2 * weight_vmem                         # resident weights/biases
                + 8 * tb * LANE * 4)                      # activation temporaries
    vmem_limit = int(min(vmem_cap_eff,
                         max(int(vmem_est * 1.25) + (1 << 20), 32 << 20)))

    # --- Pallas call: 1-D parallel grid over batch tiles, weights resident ----
    def const_spec(shape):
        return pl.BlockSpec(shape, lambda i: (0, 0))

    out_p = pl.pallas_call(
        functools.partial(_mlp_kernel, act_dtype=act_dtype),
        out_shape=jax.ShapeDtypeStruct((B_pad, out_pad), jnp.float32),
        grid_spec=pltpu.PrefetchScalarGridSpec(
            num_scalar_prefetch=0,
            grid=grid,
            in_specs=[
                pl.BlockSpec((tb, cin_pad), lambda i: (i, 0)),   # x tile
                const_spec((cin_pad, LANE)), const_spec((1, LANE)),
                const_spec((LANE, LANE)), const_spec((1, LANE)),
                const_spec((LANE, LANE)), const_spec((1, LANE)),
                const_spec((LANE, LANE)), const_spec((1, LANE)),
                const_spec((LANE, out_pad)), const_spec((1, out_pad)),
            ],
            out_specs=pl.BlockSpec((tb, out_pad), lambda i: (i, 0)),
        ),
        compiler_params=pltpu.CompilerParams(
            dimension_semantics=("parallel",),
            vmem_limit_bytes=vmem_limit),
        cost_estimate=cost,
    )(x_p, w1, b1, w2, b2, w3, b3, w4, b4, w5, b5)

    return out_p[:B, :Cout]


def force_network_forward(x, params):
    """x: [B, in_channels] float32; params: PyTorch convention (W [out,in], b [out])."""
    n_tc, vmem_cap, bf16_act = _chip_info()
    return _forward(x, params, n_tc=n_tc, bf16_act=bf16_act, vmem_cap=vmem_cap)


def init_params(key, in_channels, out_channels):
    """Deterministic init mirroring nn.Linear's default U(-1/sqrt(fan_in), ...)."""
    dims = [(in_channels, HIDDEN), (HIDDEN, HIDDEN), (HIDDEN, HIDDEN),
            (HIDDEN, HIDDEN), (HIDDEN, out_channels)]
    params = {}
    for idx, (fan_in, fan_out) in enumerate(dims, start=1):
        key, kw, kb = jax.random.split(key, 3)
        bound = 1.0 / jnp.sqrt(jnp.float32(fan_in))
        params[f"W{idx}"] = jax.random.uniform(
            kw, (fan_out, fan_in), jnp.float32, -bound, bound)
        params[f"b{idx}"] = jax.random.uniform(
            kb, (fan_out,), jnp.float32, -bound, bound)
    return params


def reference_forward(x, params):
    h = x
    for i in range(1, 6):
        h = h @ params[f"W{i}"].T + params[f"b{i}"]
        if i < 5:
            h = jnp.where(h > 0, h, NEG_SLOPE * h)
    return h


if __name__ == "__main__":
    key = jax.random.PRNGKey(0)
    k_param, k_x, k_x2 = jax.random.split(key, 3)

    in_channels, out_channels = 6, 3
    params = init_params(k_param, in_channels, out_channels)

    # Small shape (matches the toy module usage): single grid step.
    batch = 8
    x = jax.random.normal(k_x, (batch, in_channels), jnp.float32)
    out = jax.block_until_ready(force_network_forward(x, params))
    ref = reference_forward(x, params)
    assert out.shape == (batch, out_channels)
    # bf16 MXU inputs / bf16 activations -> loosened tolerance vs f32 reference.
    assert jnp.allclose(out, ref, atol=2e-2, rtol=2e-2), "small-batch mismatch"

    # Larger batch: exercises row padding and (on v7x) the 2-tile parallel grid.
    batch2 = 1000
    x2 = jax.random.normal(k_x2, (batch2, in_channels), jnp.float32)
    out2 = jax.block_until_ready(force_network_forward(x2, params))
    ref2 = reference_forward(x2, params)
    assert out2.shape == (batch2, out_channels)
    assert jnp.allclose(out2, ref2, atol=2e-2, rtol=2e-2), "large-batch mismatch"

    print("KERNEL_OK")
</pallas_src>

<mosaic_0001>
module attributes {stable_mosaic.version = 11 : i64} {
  func.func @_mlp_kernel(%arg0: i32, %arg1: memref<8x8xf32, #tpu.memory_space<vmem>>, %arg2: memref<8x128xf32, #tpu.memory_space<vmem>>, %arg3: memref<1x128xf32, #tpu.memory_space<vmem>>, %arg4: memref<128x128xbf16, #tpu.memory_space<vmem>>, %arg5: memref<1x128xbf16, #tpu.memory_space<vmem>>, %arg6: memref<128x128xbf16, #tpu.memory_space<vmem>>, %arg7: memref<1x128xbf16, #tpu.memory_space<vmem>>, %arg8: memref<128x128xbf16, #tpu.memory_space<vmem>>, %arg9: memref<1x128xbf16, #tpu.memory_space<vmem>>, %arg10: memref<128x8xbf16, #tpu.memory_space<vmem>>, %arg11: memref<1x8xf32, #tpu.memory_space<vmem>>, %arg12: memref<8x8xf32, #tpu.memory_space<vmem>>) attributes {dimension_semantics = [#tpu.dimension_semantics<parallel>], iteration_bounds = array<i64: 1>, scalar_prefetch = 0 : i64, scratch_operands = 0 : i64, tpu.core_type = #tpu.core_type<tc>, window_params = [{transform_indices = @transform_0, window_bounds = array<i64: 8, 8>}, {pipeline_mode = #tpu.pipeline_mode<synchronous>, transform_indices = @transform_1, window_bounds = array<i64: 8, 128>}, {pipeline_mode = #tpu.pipeline_mode<synchronous>, transform_indices = @transform_2, window_bounds = array<i64: 1, 128>}, {pipeline_mode = #tpu.pipeline_mode<synchronous>, transform_indices = @transform_3, window_bounds = array<i64: 128, 128>}, {pipeline_mode = #tpu.pipeline_mode<synchronous>, transform_indices = @transform_4, window_bounds = array<i64: 1, 128>}, {pipeline_mode = #tpu.pipeline_mode<synchronous>, transform_indices = @transform_5, window_bounds = array<i64: 128, 128>}, {pipeline_mode = #tpu.pipeline_mode<synchronous>, transform_indices = @transform_6, window_bounds = array<i64: 1, 128>}, {pipeline_mode = #tpu.pipeline_mode<synchronous>, transform_indices = @transform_7, window_bounds = array<i64: 128, 128>}, {pipeline_mode = #tpu.pipeline_mode<synchronous>, transform_indices = @transform_8, window_bounds = array<i64: 1, 128>}, {pipeline_mode = #tpu.pipeline_mode<synchronous>, transform_indices = @transform_9, window_bounds = array<i64: 128, 8>}, {pipeline_mode = #tpu.pipeline_mode<synchronous>, transform_indices = @transform_10, window_bounds = array<i64: 1, 8>}, {transform_indices = @transform_11, window_bounds = array<i64: 8, 8>}]} {
    %c0 = arith.constant 0 : index
    %c0_0 = arith.constant 0 : index
    %0 = vector.load %arg1[%c0, %c0_0] : memref<8x8xf32, #tpu.memory_space<vmem>>, vector<8x8xf32>
    %c0_1 = arith.constant 0 : index
    %c0_2 = arith.constant 0 : index
    %1 = vector.load %arg2[%c0_1, %c0_2] : memref<8x128xf32, #tpu.memory_space<vmem>>, vector<8x128xf32>
    %cst = arith.constant dense<0.000000e+00> : vector<8x128xf32>
    %2 = tpu.matmul %0, %1, %cst {dimension_numbers = #tpu.dot_dimension_numbers<[1], [0], [0], [1], [0, 0, 1, 1], [], []>} : vector<8x8xf32>, vector<8x128xf32>, vector<8x128xf32> -> vector<8x128xf32>
    %c0_3 = arith.constant 0 : index
    %c0_4 = arith.constant 0 : index
    %3 = vector.load %arg3[%c0_3, %c0_4] : memref<1x128xf32, #tpu.memory_space<vmem>>, vector<1x128xf32>
    %4 = vector.broadcast %3 : vector<1x128xf32> to vector<8x128xf32>
    %5 = arith.addf %2, %4 : vector<8x128xf32>
    %cst_5 = arith.constant 0.000000e+00 : f32
    %6 = vector.broadcast %cst_5 : f32 to vector<8x128xf32>
    %7 = arith.cmpf ogt, %5, %6 : vector<8x128xf32>
    %cst_6 = arith.constant 0.00999999977 : f32
    %8 = vector.broadcast %cst_6 : f32 to vector<8x128xf32>
    %9 = arith.mulf %8, %5 : vector<8x128xf32>
    %10 = arith.select %7, %5, %9 : vector<8x128xi1>, vector<8x128xf32>
    %11 = arith.truncf %10 : vector<8x128xf32> to vector<8x128xbf16>
    %c0_7 = arith.constant 0 : index
    %c0_8 = arith.constant 0 : index
    %12 = vector.load %arg4[%c0_7, %c0_8] : memref<128x128xbf16, #tpu.memory_space<vmem>>, vector<128x128xbf16>
    %cst_9 = arith.constant dense<0.000000e+00> : vector<8x128xf32>
    %13 = tpu.matmul %11, %12, %cst_9 {dimension_numbers = #tpu.dot_dimension_numbers<[1], [0], [0], [1], [0, 0, 1, 1], [], []>} : vector<8x128xbf16>, vector<128x128xbf16>, vector<8x128xf32> -> vector<8x128xf32>
    %14 = arith.truncf %13 : vector<8x128xf32> to vector<8x128xbf16>
    %c0_10 = arith.constant 0 : index
    %c0_11 = arith.constant 0 : index
    %15 = vector.load %arg5[%c0_10, %c0_11] : memref<1x128xbf16, #tpu.memory_space<vmem>>, vector<1x128xbf16>
    %16 = vector.broadcast %15 : vector<1x128xbf16> to vector<8x128xbf16>
    %17 = arith.addf %14, %16 : vector<8x128xbf16>
    %cst_12 = arith.constant 0.000000e+00 : bf16
    %18 = vector.broadcast %cst_12 : bf16 to vector<8x128xbf16>
    %19 = arith.cmpf ogt, %17, %18 : vector<8x128xbf16>
    %cst_13 = arith.constant 1.000980e-02 : bf16
    %20 = vector.broadcast %cst_13 : bf16 to vector<8x128xbf16>
    %21 = arith.mulf %20, %17 : vector<8x128xbf16>
    %22 = arith.select %19, %17, %21 : vector<8x128xi1>, vector<8x128xbf16>
    %c0_14 = arith.constant 0 : index
    %c0_15 = arith.constant 0 : index
    %23 = vector.load %arg6[%c0_14, %c0_15] : memref<128x128xbf16, #tpu.memory_space<vmem>>, vector<128x128xbf16>
    %cst_16 = arith.constant dense<0.000000e+00> : vector<8x128xf32>
    %24 = tpu.matmul %22, %23, %cst_16 {dimension_numbers = #tpu.dot_dimension_numbers<[1], [0], [0], [1], [0, 0, 1, 1], [], []>} : vector<8x128xbf16>, vector<128x128xbf16>, vector<8x128xf32> -> vector<8x128xf32>
    %25 = arith.truncf %24 : vector<8x128xf32> to vector<8x128xbf16>
    %c0_17 = arith.constant 0 : index
    %c0_18 = arith.constant 0 : index
    %26 = vector.load %arg7[%c0_17, %c0_18] : memref<1x128xbf16, #tpu.memory_space<vmem>>, vector<1x128xbf16>
    %27 = vector.broadcast %26 : vector<1x128xbf16> to vector<8x128xbf16>
    %28 = arith.addf %25, %27 : vector<8x128xbf16>
    %cst_19 = arith.constant 0.000000e+00 : bf16
    %29 = vector.broadcast %cst_19 : bf16 to vector<8x128xbf16>
    %30 = arith.cmpf ogt, %28, %29 : vector<8x128xbf16>
    %cst_20 = arith.constant 1.000980e-02 : bf16
    %31 = vector.broadcast %cst_20 : bf16 to vector<8x128xbf16>
    %32 = arith.mulf %31, %28 : vector<8x128xbf16>
    %33 = arith.select %30, %28, %32 : vector<8x128xi1>, vector<8x128xbf16>
    %c0_21 = arith.constant 0 : index
    %c0_22 = arith.constant 0 : index
    %34 = vector.load %arg8[%c0_21, %c0_22] : memref<128x128xbf16, #tpu.memory_space<vmem>>, vector<128x128xbf16>
    %cst_23 = arith.constant dense<0.000000e+00> : vector<8x128xf32>
    %35 = tpu.matmul %33, %34, %cst_23 {dimension_numbers = #tpu.dot_dimension_numbers<[1], [0], [0], [1], [0, 0, 1, 1], [], []>} : vector<8x128xbf16>, vector<128x128xbf16>, vector<8x128xf32> -> vector<8x128xf32>
    %36 = arith.truncf %35 : vector<8x128xf32> to vector<8x128xbf16>
    %c0_24 = arith.constant 0 : index
    %c0_25 = arith.constant 0 : index
    %37 = vector.load %arg9[%c0_24, %c0_25] : memref<1x128xbf16, #tpu.memory_space<vmem>>, vector<1x128xbf16>
    %38 = vector.broadcast %37 : vector<1x128xbf16> to vector<8x128xbf16>
    %39 = arith.addf %36, %38 : vector<8x128xbf16>
    %cst_26 = arith.constant 0.000000e+00 : bf16
    %40 = vector.broadcast %cst_26 : bf16 to vector<8x128xbf16>
    %41 = arith.cmpf ogt, %39, %40 : vector<8x128xbf16>
    %cst_27 = arith.constant 1.000980e-02 : bf16
    %42 = vector.broadcast %cst_27 : bf16 to vector<8x128xbf16>
    %43 = arith.mulf %42, %39 : vector<8x128xbf16>
    %44 = arith.select %41, %39, %43 : vector<8x128xi1>, vector<8x128xbf16>
    %c0_28 = arith.constant 0 : index
    %c0_29 = arith.constant 0 : index
    %45 = vector.load %arg10[%c0_28, %c0_29] : memref<128x8xbf16, #tpu.memory_space<vmem>>, vector<128x8xbf16>
    %cst_30 = arith.constant dense<0.000000e+00> : vector<8x8xf32>
    %46 = tpu.matmul %44, %45, %cst_30 {dimension_numbers = #tpu.dot_dimension_numbers<[1], [0], [0], [1], [0, 0, 1, 1], [], []>} : vector<8x128xbf16>, vector<128x8xbf16>, vector<8x8xf32> -> vector<8x8xf32>
    %c0_31 = arith.constant 0 : index
    %c0_32 = arith.constant 0 : index
    %47 = vector.load %arg11[%c0_31, %c0_32] : memref<1x8xf32, #tpu.memory_space<vmem>>, vector<1x8xf32>
    %48 = vector.broadcast %47 : vector<1x8xf32> to vector<8x8xf32>
    %49 = arith.addf %46, %48 : vector<8x8xf32>
    %c0_33 = arith.constant 0 : index
    %c0_34 = arith.constant 0 : index
    %50 = vector.load %arg12[%c0_33, %c0_34] : memref<8x8xf32, #tpu.memory_space<vmem>>, vector<8x8xf32>
    tpu.vector_store %arg12[%c0_33, %c0_34], %49 {strides = array<i32>} : memref<8x8xf32, #tpu.memory_space<vmem>>, vector<8x8xf32>,
    return
  }
  func.func @transform_0(%arg0: i32) -> (i32, i32) {
    %c0_i32 = arith.constant 0 : i32
    %c0_i32_0 = arith.constant 0 : i32
    return %arg0, %c0_i32 : i32, i32
  }
  func.func @transform_1(%arg0: i32) -> (i32, i32) {
    %c0_i32 = arith.constant 0 : i32
    %c0_i32_0 = arith.constant 0 : i32
    %c0_i32_1 = arith.constant 0 : i32
    return %c0_i32, %c0_i32_0 : i32, i32
  }
  func.func @transform_2(%arg0: i32) -> (i32, i32) {
    %c0_i32 = arith.constant 0 : i32
    %c0_i32_0 = arith.constant 0 : i32
    %c0_i32_1 = arith.constant 0 : i32
    return %c0_i32, %c0_i32_0 : i32, i32
  }
  func.func @transform_3(%arg0: i32) -> (i32, i32) {
    %c0_i32 = arith.constant 0 : i32
    %c0_i32_0 = arith.constant 0 : i32
    %c0_i32_1 = arith.constant 0 : i32
    return %c0_i32, %c0_i32_0 : i32, i32
  }
  func.func @transform_4(%arg0: i32) -> (i32, i32) {
    %c0_i32 = arith.constant 0 : i32
    %c0_i32_0 = arith.constant 0 : i32
    %c0_i32_1 = arith.constant 0 : i32
    return %c0_i32, %c0_i32_0 : i32, i32
  }
  func.func @transform_5(%arg0: i32) -> (i32, i32) {
    %c0_i32 = arith.constant 0 : i32
    %c0_i32_0 = arith.constant 0 : i32
    %c0_i32_1 = arith.constant 0 : i32
    return %c0_i32, %c0_i32_0 : i32, i32
  }
  func.func @transform_6(%arg0: i32) -> (i32, i32) {
    %c0_i32 = arith.constant 0 : i32
    %c0_i32_0 = arith.constant 0 : i32
    %c0_i32_1 = arith.constant 0 : i32
    return %c0_i32, %c0_i32_0 : i32, i32
  }
  func.func @transform_7(%arg0: i32) -> (i32, i32) {
    %c0_i32 = arith.constant 0 : i32
    %c0_i32_0 = arith.constant 0 : i32
    %c0_i32_1 = arith.constant 0 : i32
    return %c0_i32, %c0_i32_0 : i32, i32
  }
  func.func @transform_8(%arg0: i32) -> (i32, i32) {
    %c0_i32 = arith.constant 0 : i32
    %c0_i32_0 = arith.constant 0 : i32
    %c0_i32_1 = arith.constant 0 : i32
    return %c0_i32, %c0_i32_0 : i32, i32
  }
  func.func @transform_9(%arg0: i32) -> (i32, i32) {
    %c0_i32 = arith.constant 0 : i32
    %c0_i32_0 = arith.constant 0 : i32
    %c0_i32_1 = arith.constant 0 : i32
    return %c0_i32, %c0_i32_0 : i32, i32
  }
  func.func @transform_10(%arg0: i32) -> (i32, i32) {
    %c0_i32 = arith.constant 0 : i32
    %c0_i32_0 = arith.constant 0 : i32
    %c0_i32_1 = arith.constant 0 : i32
    return %c0_i32, %c0_i32_0 : i32, i32
  }
  func.func @transform_11(%arg0: i32) -> (i32, i32) {
    %c0_i32 = arith.constant 0 : i32
    %c0_i32_0 = arith.constant 0 : i32
    return %arg0, %c0_i32 : i32, i32
  }
}

</mosaic_0001>

<bundles_post_ra>
// kernel: _forward.1
= control target key start
LH: loop header
LB: loop body
LE: loop exit
PB: predicated region body
PF: predicated region fallthrough
CT: control target
= control target key end

     0   :  { %vm49_vm0 = vcmask 64512   ;;  %v786_v0 = vmov 0.0   ;;  %vm787_vm1 = vmmov 0   ;;  %v236_v32 = vlaneseq  ;;  %s1013_s1 = inlined_call_operand.vmem [shape: f32[8,128], index: 1, kind: input, shape index: {}]   ;;  %s1014_s0 = inlined_call_operand.vmem [shape: f32[8,8], index: 0, kind: input, shape index: {}]   ;;  %s1015_s3 = inlined_call_operand.vmem [shape: bf16[128,128], index: 3, kind: input, shape index: {}]   ;;  %s1016_s5 = inlined_call_operand.vmem [shape: bf16[128,128], index: 5, kind: input, shape index: {}]   ;;  %s1017_s2 = inlined_call_operand.vmem [shape: f32[1,128], index: 2, kind: input, shape index: {}]   ;;  %s1018_s7 = inlined_call_operand.vmem [shape: bf16[128,128], index: 7, kind: input, shape index: {}]   ;;  %s1019_s4 = inlined_call_operand.vmem [shape: bf16[1,128], index: 4, kind: input, shape index: {}]   ;;  %s1020_s9 = inlined_call_operand.vmem [shape: bf16[128,8], index: 9, kind: input, shape index: {}]   ;;  %s1021_s6 = inlined_call_operand.vmem [shape: bf16[1,128], index: 6, kind: input, shape index: {}]   ;;  %s1022_s8 = inlined_call_operand.vmem [shape: bf16[1,128], index: 8, kind: input, shape index: {}]   ;;  %s1023_s10 = inlined_call_operand.vmem [shape: f32[1,8], index: 10, kind: input, shape index: {}]   ;;  %s1024_s11 = inlined_call_operand.vmem [shape: f32[8,8], index: 11, kind: output, shape index: {}]  }
   0x1   :  { %667 = vmatprep.subr.mxu0 %v786_v0  ;;  %v41_v1 = vld [vmem:[%s1013_s1] sm:$0xff]  ;;  %669 = vmatprep.mubr.msk.f32.mxu0 %vm787_vm1, %v786_v0  ;;  %v754_v3 = vld [vmem:[%s1015_s3 + $0x38] sm:$0xff]   ;;  %v755_v4 = vld [vmem:[%s1015_s3 + $0x30] sm:$0xff]  }
   0x2   :  { %v40_v2 = vld [vmem:[%s1014_s0] sm:$0xff]  ;;  %668 = vmatpush3.msra.mxu0 %v41_v1  ;;  %672 = vmatprep.subr.bf16.mxu1 %v786_v0  ;;  %v756_v5 = vld [vmem:[%s1015_s3 + $0x28] sm:$0xff]   ;;  %v758_v7 = vld [vmem:[%s1015_s3 + $0x18] sm:$0xff]   ;;  %v237_v33 = vshrl.u32 %v236_v32, 7 }
   0x3   :  { %670 = vmatmul.mubr.msk.f32.vlgmr.msra.gmra.mxu0 %vm49_vm0, %v40_v2  ;;  %688 = vmatprep.mubr.msk.bf16.mxu1 %vm787_vm1, %v786_v0  ;;  %v757_v6 = vld [vmem:[%s1015_s3 + $0x20] sm:$0xff]   ;;  %v759_v8 = vld [vmem:[%s1015_s3 + $0x10] sm:$0xff]   ;;  %v760_v9 = vld [vmem:[%s1015_s3 + $0x8] sm:$0xff]  }
   0x4   :  { %673 = vmatpush3.bf16.msra.mxu1 %v754_v3  ;;  %692 = vmatprep.subr.bf16.mxu0 %v786_v0  ;;  %v761_v10 = vld [vmem:[%s1015_s3] sm:$0xff]   ;;  %v762_v11 = vld [vmem:[%s1016_s5 + $0x38] sm:$0xff]   ;;  %v763_v12 = vld [vmem:[%s1016_s5 + $0x30] sm:$0xff]   ;;  %v238_v36 = vsub.s32 0, %v237_v33 }
   0x5   :  { %674 = vmatprep.subr.bf16.mxu1 %v786_v0  ;;  %708 = vmatprep.mubr.msk.bf16.mxu0 %vm787_vm1, %v786_v0  ;;  %v764_v13 = vld [vmem:[%s1016_s5 + $0x28] sm:$0xff]   ;;  %v765_v14 = vld [vmem:[%s1016_s5 + $0x20] sm:$0xff]   ;;  %v766_v15 = vld [vmem:[%s1016_s5 + $0x18] sm:$0xff]  }
   0x6   :  { %693 = vmatpush3.bf16.msra.mxu0 %v762_v11  ;;  %v767_v16 = vld [vmem:[%s1016_s5 + $0x10] sm:$0xff]   ;;  %v594_v17 = vld [vmem:[%s1017_s2] ss:$0 sm:$0xff]  ;;  %v768_v24 = vld [vmem:[%s1016_s5 + $0x8] sm:$0xff]  }
   0x7   :  { %694 = vmatprep.subr.bf16.mxu0 %v786_v0  ;;  %v769_v25 = vld [vmem:[%s1016_s5] sm:$0xff]   ;;  %v770_v26 = vld [vmem:[%s1018_s7 + $0x38] sm:$0xff]   ;;  %v771_v27 = vld [vmem:[%s1018_s7 + $0x30] sm:$0xff]  }
   0x8   :  { %675 = vmatpush3.bf16.msra.mxu1 %v755_v4  ;;  %v772_v28 = vld [vmem:[%s1018_s7 + $0x28] sm:$0xff]   ;;  %v773_v29 = vld [vmem:[%s1018_s7 + $0x20] sm:$0xff]   ;;  %v774_v30 = vld [vmem:[%s1018_s7 + $0x18] sm:$0xff]  }
   0x9   :  { %676 = vmatprep.subr.bf16.mxu1 %v786_v0  ;;  %v775_v31 = vld [vmem:[%s1018_s7 + $0x10] sm:$0xff]   ;;  %v232_v34 = vld [vmem:[%s1019_s4] sm:$0x1]  ;;  %v776_v46 = vld [vmem:[%s1018_s7 + $0x8] sm:$0xff]  }
   0xa   :  { %695 = vmatpush3.bf16.msra.mxu0 %v763_v12  ;;  %v234_v35 = vpack.i.b16 %v232_v34, %v232_v34  ;;  %v777_v47 = vld [vmem:[%s1018_s7] sm:$0xff]   ;;  %v778_v48 = vld [vmem:[%s1020_s9 + $0x38] sm:$0xff]   ;;  %v779_v49 = vld [vmem:[%s1020_s9 + $0x30] sm:$0xff]  }
   0xb   :  { %696 = vmatprep.subr.bf16.mxu0 %v786_v0  ;;  %v780_v50 = vld [vmem:[%s1020_s9 + $0x28] sm:$0xff]   ;;  %v781_v51 = vld [vmem:[%s1020_s9 + $0x20] sm:$0xff]   ;;  %v782_v52 = vld [vmem:[%s1020_s9 + $0x18] sm:$0xff]  }
   0xc   :  { %677 = vmatpush3.bf16.msra.mxu1 %v756_v5  ;;  %v239_v37 = vrot.slane %v234_v35, %v238_v36  ;;  %v783_v53 = vld [vmem:[%s1020_s9 + $0x10] sm:$0xff]   ;;  %v349_v54 = vld [vmem:[%s1021_s6] sm:$0x1]  ;;  %v784_v2 = vld [vmem:[%s1020_s9 + $0x8] sm:$0xff]  }
   0xd   :  { %678 = vmatprep.subr.bf16.mxu1 %v786_v0  ;;  %v351_v55 = vpack.i.b16 %v349_v54, %v349_v54  ;;  %v785_v3 = vld [vmem:[%s1020_s9] sm:$0xff]  }
   0xe   :  { %697 = vmatpush3.bf16.msra.mxu0 %v764_v13  ;;  %v466_v4 = vld [vmem:[%s1022_s8] sm:$0x1] }
   0xf   :  { %698 = vmatprep.subr.bf16.mxu0 %v786_v0  ;;  %v356_v56 = vrot.slane %v351_v55, %v238_v36  ;;  %v468_v5 = vpack.i.b16 %v466_v4, %v466_v4 }
  0x10   :  { %679 = vmatpush3.bf16.msra.mxu1 %v757_v6 }
  0x11   :  { %680 = vmatprep.subr.bf16.mxu1 %v786_v0  ;;  %v473_v6 = vrot.slane %v468_v5, %v238_v36 }
  0x12   :  { %699 = vmatpush3.bf16.msra.mxu0 %v765_v14  ;;  %v620_v14 = vld [vmem:[%s1023_s10] ss:$0 sm:$0xff] }
  0x13   :  { %700 = vmatprep.subr.bf16.mxu0 %v786_v0 }
  0x14   :  { %681 = vmatpush3.bf16.msra.mxu1 %v758_v7 }
  0x15   :  { %682 = vmatprep.subr.bf16.mxu1 %v786_v0 }
  0x16   :  { %701 = vmatpush3.bf16.msra.mxu0 %v766_v15 }
  0x17   :  { %702 = vmatprep.subr.bf16.mxu0 %v786_v0 }
  0x18   :  { %683 = vmatpush3.bf16.msra.mxu1 %v759_v8 }
  0x19   :  { %684 = vmatprep.subr.bf16.mxu1 %v786_v0 }
  0x1a   :  { %703 = vmatpush3.bf16.msra.mxu0 %v767_v16 }
  0x1b   :  { %704 = vmatprep.subr.bf16.mxu0 %v786_v0 }
  0x1c   :  { %685 = vmatpush3.bf16.msra.mxu1 %v760_v9 }
  0x1d   :  { %686 = vmatprep.subr.bf16.mxu1 %v786_v0 }
  0x1e   :  { %705 = vmatpush3.bf16.msra.mxu0 %v768_v24 }
  0x1f   :  { %706 = vmatprep.subr.bf16.mxu0 %v786_v0 }
  0x20   :  { %687 = vmatpush3.bf16.msra.mxu1 %v761_v10 }
  0x21   :  { %712 = vmatprep.subr.bf16.mxu1 %v786_v0 }
  0x22   :  { %707 = vmatpush3.bf16.msra.mxu0 %v769_v25 }
  0x23   :  { %732 = vmatprep.subr.bf16.mxu0 %v786_v0 }
  0xc3   :  { %v119_v18 = vpop.f32.mrf.mxu0 }
  0xc4   :  { %v120_v19 = vadd.f32 %v594_v17, %v119_v18 }
  0xc5   :  { %v671_v20 = vpop.f32.mrf.mxu0 }
  0xc6   :  { %vm123_vm2 = vcmp.gt.f32.partialorder %v120_v19, 0.0  ;;  %v124_v21 = vmul.f32 0.01, %v120_v19 }
  0xc8   :  { %v125_v22 = vsel %vm123_vm2, %v120_v19, %v124_v21 }
  0xc9   :  { %v126_v23 = vpack.c.bf16 %v125_v22, %v125_v22 }
  0xcb   :  { %689 = vmatmul.mubr.bf16.vlgmr.msra.gmra.mxu1 %v126_v23 }
  0xcc   :  { %728 = vmatprep.mubr.msk.bf16.mxu1 %vm787_vm1, %v786_v0  ;;  %713 = vmatpush3.bf16.msra.mxu1 %v770_v26 }
  0xcd   :  { %714 = vmatprep.subr.bf16.mxu1 %v786_v0 }
  0xd0   :  { %715 = vmatpush3.bf16.msra.mxu1 %v771_v27 }
  0xd1   :  { %716 = vmatprep.subr.bf16.mxu1 %v786_v0 }
  0xd4   :  { %717 = vmatpush3.bf16.msra.mxu1 %v772_v28 }
  0xd5   :  { %718 = vmatprep.subr.bf16.mxu1 %v786_v0 }
  0xd8   :  { %719 = vmatpush3.bf16.msra.mxu1 %v773_v29 }
  0xd9   :  { %720 = vmatprep.subr.bf16.mxu1 %v786_v0 }
  0xdc   :  { %721 = vmatpush3.bf16.msra.mxu1 %v774_v30 }
  0xdd   :  { %722 = vmatprep.subr.bf16.mxu1 %v786_v0 }
  0xe0   :  { %723 = vmatpush3.bf16.msra.mxu1 %v775_v31 }
  0xe1   :  { %724 = vmatprep.subr.bf16.mxu1 %v786_v0 }
  0xe4   :  { %725 = vmatpush3.bf16.msra.mxu1 %v776_v46 }
  0xe5   :  { %726 = vmatprep.subr.bf16.mxu1 %v786_v0 }
  0xe8   :  { %727 = vmatpush3.bf16.msra.mxu1 %v777_v47 }
 0x18b   :  { %v225_v38 = vpop.f32.mrf.mxu1 }
 0x18c   :  { %v231_v39 = vpack.c.bf16 %v225_v38, %v225_v38 }
 0x18d   :  { %v690_v40 = vpop.f32.mrf.mxu1 }
 0x18e   :  { %v240_v41 = vadd.bf16 %v239_v37, %v231_v39 }
 0x18f   :  { %v228_v42 = vpop.f32.mrf.mxu1 }
 0x190   :  { %v242_v43 = vmul.bf16 1009007652, %v240_v41  ;;  %vm241_vm3 = vcmp.gt.bf16.partialorder %v240_v41, 0 }
 0x191   :  { %v691_v44 = vpop.f32.mrf.mxu1 }
 0x192   :  { %v243_v45 = vsel %vm241_vm3, %v240_v41, %v242_v43 }
 0x193   :  { %709 = vmatmul.mubr.bf16.vlgmr.msra.gmra.mxu0 %v243_v45 }
 0x194   :  { %748 = vmatprep.mubr.msk.bf16.mxu0 %vm787_vm1, %v786_v0  ;;  %733 = vmatpush3.bf16.msra.mxu0 %v778_v48 }
 0x195   :  { %734 = vmatprep.subr.bf16.mxu0 %v786_v0 }
 0x198   :  { %735 = vmatpush3.bf16.msra.mxu0 %v779_v49 }
 0x199   :  { %736 = vmatprep.subr.bf16.mxu0 %v786_v0 }
 0x19c   :  { %737 = vmatpush3.bf16.msra.mxu0 %v780_v50 }
 0x19d   :  { %738 = vmatprep.subr.bf16.mxu0 %v786_v0 }
 0x1a0   :  { %739 = vmatpush3.bf16.msra.mxu0 %v781_v51 }
 0x1a1   :  { %740 = vmatprep.subr.bf16.mxu0 %v786_v0 }
 0x1a4   :  { %741 = vmatpush3.bf16.msra.mxu0 %v782_v52 }
 0x1a5   :  { %742 = vmatprep.subr.bf16.mxu0 %v786_v0 }
 0x1a8   :  { %743 = vmatpush3.bf16.msra.mxu0 %v783_v53 }
 0x1a9   :  { %744 = vmatprep.subr.bf16.mxu0 %v786_v0 }
 0x1ac   :  { %745 = vmatpush3.bf16.msra.mxu0 %v784_v2 }
 0x1ad   :  { %746 = vmatprep.subr.bf16.mxu0 %v786_v0 }
 0x1b0   :  { %747 = vmatpush3.bf16.msra.mxu0 %v785_v3 }
 0x253   :  { %v342_v57 = vpop.f32.mrf.mxu0 }
 0x254   :  { %v348_v58 = vpack.c.bf16 %v342_v57, %v342_v57 }
 0x255   :  { %v710_v59 = vpop.f32.mrf.mxu0 }
 0x256   :  { %v357_v60 = vadd.bf16 %v356_v56, %v348_v58 }
 0x257   :  { %v345_v61 = vpop.f32.mrf.mxu0 }
 0x258   :  { %v359_v62 = vmul.bf16 1009007652, %v357_v60  ;;  %vm358_vm4 = vcmp.gt.bf16.partialorder %v357_v60, 0 }
 0x259   :  { %v711_v63 = vpop.f32.mrf.mxu0 }
 0x25a   :  { %v360_v1 = vsel %vm358_vm4, %v357_v60, %v359_v62 }
 0x25b   :  { %729 = vmatmul.mubr.bf16.vlgmr.msra.gmra.mxu1 %v360_v1 }
 0x31b   :  { %v459_v7 = vpop.f32.mrf.mxu1 }
 0x31c   :  { %v465_v8 = vpack.c.bf16 %v459_v7, %v459_v7 }
 0x31d   :  { %v730_v9 = vpop.f32.mrf.mxu1 }
 0x31e   :  { %v474_v10 = vadd.bf16 %v473_v6, %v465_v8 }
 0x31f   :  { %v462_v11 = vpop.f32.mrf.mxu1 }
 0x320   :  { %v476_v12 = vmul.bf16 1009007652, %v474_v10  ;;  %vm475_vm5 = vcmp.gt.bf16.partialorder %v474_v10, 0 }
 0x321   :  { %v731_v13 = vpop.f32.mrf.mxu1 }
 0x322   :  { %v477_v0 = vsel %vm475_vm5, %v474_v10, %v476_v12 }
 0x323   :  { %749 = vmatmul.mubr.bf16.vlgmr.msra.gmra.mxu0 %v477_v0 }
 0x3e3   :  { %v583_v15 = vpop.f32.mrf.mxu0 }
 0x3e4   :  { %v584_v16 = vadd.f32 %v620_v14, %v583_v15 }
 0x3e5   :  { %v750_v17 = vpop.f32.mrf.mxu0 }
 0x3e6   :  { %589 = vst.msk [vmem:[%s1024_s11] sm:$0xff] %vm49_vm0, %v584_v16 }
 0x3e7   :  { %v586_v18 = vpop.f32.mrf.mxu0 }
 0x3e9   :  { %v751_v19 = vpop.f32.mrf.mxu0 }

</bundles_post_ra>
